<compile_context>
chip_gen: v5e
topology: v5e:2x2
jax: 0.10.0
libtpu: 0.0.40
codegen_flags: <defaults>
</compile_context>

<pallas_src>
import functools
import math

import jax
import jax.numpy as jnp
from jax import lax
from jax.experimental import pallas as pl
from jax.experimental.pallas import tpu as pltpu


def _round_up(n, m):
    return (n + m - 1) // m * m


# ------------------------------ fused kernel ------------------------------- #

def _aspp_fused_kernel(x_ref, w0_ref, wd_ref, wp_ref, bcat_ref, bp_ref, o_ref,
                       *, H, Wp, d_max, rates):
    # x_ref  : (Cin_p, Lflat)   flattened, max-rate padded image (channels first)
    # w0_ref : (Cout_p, Cin_p)              1x1 weights   (BN scale folded in)
    # wd_ref : (R, Cout_p, 9*Cin_p)         3x3 weights, tap-major K layout
    # wp_ref : (Cout_p, (R+1)*Cout_p)       projection weights
    # bcat_ref: ((R+1)*Cout_p, 1)           per-branch BN biases (concat order)
    # bp_ref : (Cout_p, 1)                  projection BN bias
    # o_ref  : (Cout_p, L)   with L = H*Wp  (garbage columns sliced off outside)
    L = H * Wp
    x = x_ref[...]                                     # whole padded image (VMEM)

    def window(off):                                   # (Cin_p, L) lane slice
        return x[:, off:off + L]

    # branch 0: 1x1 conv
    center = d_max * Wp + d_max
    branch = [jnp.dot(w0_ref[...], window(center),
                      preferred_element_type=jnp.float32)]

    # dilated 3x3 branches: one K-stacked matmul per rate (K = 9*Cin_p)
    for r, d in enumerate(rates):
        taps = [window((d_max - d + ky * d) * Wp + (d_max - d + kx * d))
                for ky in range(3) for kx in range(3)]
        xs = jnp.concatenate(taps, axis=0)             # (9*Cin_p, L)
        branch.append(jnp.dot(wd_ref[r], xs,
                              preferred_element_type=jnp.float32))

    # concat (stays in VMEM) + bias + ReLU
    cat = jnp.concatenate(branch, axis=0)              # ((R+1)*Cout_p, L)
    cat = jnp.maximum(cat + bcat_ref[...], 0.0)

    # projection 1x1 + bias + ReLU
    y = jnp.dot(wp_ref[...], cat.astype(wp_ref.dtype),
                preferred_element_type=jnp.float32)
    y = jnp.maximum(y + bp_ref[...], 0.0)
    o_ref[...] = y.astype(o_ref.dtype)


# ---------------------------- parameter folding ----------------------------- #

def _fold_bn(gamma, beta, mean, var, eps=1e-5):
    scale = gamma * lax.rsqrt(var + eps)
    bias = beta - mean * scale
    return scale, bias


def _prepare_params(params, rates, Cin_p):
    """Fold BN scales into weights and lay them out for the fused kernel."""
    def padc(a, axis, tgt):
        widths = [(0, 0)] * a.ndim
        widths[axis] = (0, tgt - a.shape[axis])
        return jnp.pad(a, widths)

    s0, b0 = params["bn0"]
    Cout = int(s0.shape[0])
    Cout_p = _round_up(Cout, 8)
    nr = len(rates)

    # 1x1 branch: (Cin, Cout) -> (Cout_p, Cin_p)
    w0m = padc(padc(params["w0"].T * s0[:, None], 0, Cout_p), 1, Cin_p)

    # dilated branches: HWIO (3,3,Cin,Cout) -> (Cout_p, 9*Cin_p), tap-major K
    wd_list, bd_list = [], []
    for w, (s, b) in zip(params["wd"], params["bnd"]):
        wm = jnp.transpose(w, (3, 0, 1, 2)) * s[:, None, None, None]
        wm = padc(padc(wm, 0, Cout_p), 3, Cin_p).reshape(Cout_p, 9 * Cin_p)
        wd_list.append(wm)
        bd_list.append(padc(b, 0, Cout_p))
    wdm = jnp.stack(wd_list, axis=0)                   # (nr, Cout_p, 9*Cin_p)

    # projection: (4*Cout, Cout) -> (Cout_p, (nr+1)*Cout_p), concat-block layout
    sp, bpv = params["bnp"]
    wpm = (params["wp"].T * sp[:, None]).reshape(Cout, nr + 1, Cout)
    wpm = padc(padc(wpm, 2, Cout_p), 0, Cout_p)
    wpm = wpm.reshape(Cout_p, (nr + 1) * Cout_p)

    bcat = jnp.concatenate([padc(b0, 0, Cout_p)] + bd_list)[:, None]
    bp = padc(bpv, 0, Cout_p)[:, None]
    return w0m, wdm, wpm, bcat, bp, Cout, Cout_p


def init_aspp_params(key, in_channels, out_channels, atrous_rates):
    assert len(atrous_rates) == 3, "project expects 4*out_channels inputs"
    keys = jax.random.split(key, 16)
    ki = iter(range(16))
    params = {}

    def bn(c, k1, k2):
        gamma = 1.0 + 0.1 * jax.random.normal(k1, (c,), jnp.float32)
        beta = 0.05 * jax.random.normal(k2, (c,), jnp.float32)
        mean = 0.01 * jnp.arange(c, dtype=jnp.float32)
        var = 1.0 + 0.02 * jnp.arange(c, dtype=jnp.float32)
        return _fold_bn(gamma, beta, mean, var)

    params["w0"] = 0.2 * jax.random.normal(
        keys[next(ki)], (in_channels, out_channels), jnp.float32)
    params["bn0"] = bn(out_channels, keys[next(ki)], keys[next(ki)])

    params["wd"], params["bnd"] = [], []
    for _ in atrous_rates:
        params["wd"].append(0.2 * jax.random.normal(
            keys[next(ki)], (3, 3, in_channels, out_channels), jnp.float32))
        params["bnd"].append(bn(out_channels, keys[next(ki)], keys[next(ki)]))

    params["wp"] = 0.2 * jax.random.normal(
        keys[next(ki)], (4 * out_channels, out_channels), jnp.float32)
    params["bnp"] = bn(out_channels, keys[next(ki)], keys[next(ki)])
    return params


# --------------------------------- forward ---------------------------------- #

def aspp_forward(x_nchw, params, atrous_rates, *, compute_dtype=jnp.float32):
    # compute_dtype=jnp.bfloat16 halves DMA bytes / doubles MXU rate on
    # v6e/v7x (accumulation stays f32); f32 is used here for tight verification.
    N, Cin, H, W = x_nchw.shape
    rates = tuple(int(r) for r in atrous_rates)
    d_max = max(rates)

    # Shared padded width; round it up so H*Wp (flattened lane extent) is a
    # multiple of 128 -> fully unmasked vector stores (only when cheap).
    Wp = W + 2 * d_max
    lane_mult = 128 // math.gcd(H, 128)
    Wp_r = _round_up(Wp, lane_mult)
    if Wp_r - Wp <= 32:
        Wp = Wp_r
    Hp = H + 2 * d_max
    L = H * Wp
    Lflat = (Hp + 1) * Wp        # +1 bottom row keeps every tap window in bounds

    Cin_p = _round_up(Cin, 8)
    w0m, wdm, wpm, bcat, bp, Cout, Cout_p = _prepare_params(params, rates, Cin_p)

    # ONE shared zero-padded copy of the input, flattened to (N, Cin_p, Lflat).
    xpad = jnp.pad(x_nchw.astype(compute_dtype),
                   ((0, 0), (0, Cin_p - Cin),
                    (d_max, d_max + 1), (d_max, Wp - W - d_max)))
    xflat = xpad.reshape(N, Cin_p, Lflat)

    if compute_dtype != jnp.float32:
        w0m = w0m.astype(compute_dtype)
        wdm = wdm.astype(compute_dtype)
        wpm = wpm.astype(compute_dtype)

    nr = len(rates)
    kernel = functools.partial(_aspp_fused_kernel,
                               H=H, Wp=Wp, d_max=d_max, rates=rates)

    out_flat = pl.pallas_call(
        kernel,
        out_shape=jax.ShapeDtypeStruct((N, Cout_p, L), jnp.float32),
        grid=(N,),
        in_specs=[
            pl.BlockSpec((None, Cin_p, Lflat), lambda n: (n, 0, 0)),
            pl.BlockSpec((Cout_p, Cin_p), lambda n: (0, 0)),
            pl.BlockSpec((nr, Cout_p, 9 * Cin_p), lambda n: (0, 0, 0)),
            pl.BlockSpec((Cout_p, (nr + 1) * Cout_p), lambda n: (0, 0)),
            pl.BlockSpec(((nr + 1) * Cout_p, 1), lambda n: (0, 0)),
            pl.BlockSpec((Cout_p, 1), lambda n: (0, 0)),
        ],
        out_specs=pl.BlockSpec((None, Cout_p, L), lambda n: (n, 0, 0)),
        compiler_params=pltpu.CompilerParams(
            dimension_semantics=("parallel",)),
    )(xflat, w0m, wdm, wpm, bcat, bp)

    # drop padded channels / padded columns -> NCHW output
    out = out_flat.reshape(N, Cout_p, H, Wp)[:, :Cout, :, :W]
    return out


# ----------------------------- pure-JAX reference ---------------------------- #

def _ref_forward(x_nchw, params, atrous_rates):
    x = jnp.transpose(x_nchw, (0, 2, 3, 1)).astype(jnp.float32)
    dn = ("NHWC", "HWIO", "NHWC")

    def relu_bias(y, b):
        return jnp.maximum(y + b, 0.0)

    s0, b0 = params["bn0"]
    res = [relu_bias(jnp.einsum("nhwc,cd->nhwd", x, params["w0"] * s0[None, :]), b0)]
    for w, (s, b), r in zip(params["wd"], params["bnd"], atrous_rates):
        y = lax.conv_general_dilated(x, w * s[None, None, None, :], (1, 1),
                                     [(r, r), (r, r)], rhs_dilation=(r, r),
                                     dimension_numbers=dn)
        res.append(relu_bias(y, b))
    cat = jnp.concatenate(res, axis=-1)
    sp, bpv = params["bnp"]
    out = relu_bias(jnp.einsum("nhwc,cd->nhwd", cat, params["wp"] * sp[None, :]), bpv)
    return jnp.transpose(out, (0, 3, 1, 2))


# ----------------------------------- main ------------------------------------ #

if __name__ == "__main__":
    key = jax.random.PRNGKey(0)
    k_x, k_p = jax.random.split(key)

    N, Cin, H, W = 2, 4, 16, 16
    Cout = 8
    atrous_rates = (1, 2, 3)   # 3 rates + 1x1 branch => 4*Cout into project

    x = jax.random.normal(k_x, (N, Cin, H, W), jnp.float32)
    params = init_aspp_params(k_p, Cin, Cout, atrous_rates)

    fwd = jax.jit(lambda xx, pp: aspp_forward(xx, pp, atrous_rates))
    ref_fn = jax.jit(lambda xx, pp: _ref_forward(xx, pp, atrous_rates))

    out = jax.block_until_ready(fwd(x, params))
    ref = jax.block_until_ready(ref_fn(x, params))

    assert out.shape == (N, Cout, H, W)
    assert jnp.allclose(out, ref, atol=1e-3, rtol=1e-3), "mismatch vs reference"

    print("KERNEL_OK")
</pallas_src>

<mosaic_0001>
module attributes {stable_mosaic.version = 11 : i64} {
  func.func @_aspp_fused_kernel(%arg0: i32, %arg1: memref<1x8x552xf32, #tpu.memory_space<vmem>>, %arg2: memref<8x8xf32, #tpu.memory_space<vmem>>, %arg3: memref<3x8x72xf32, #tpu.memory_space<vmem>>, %arg4: memref<8x32xf32, #tpu.memory_space<vmem>>, %arg5: memref<32x1xf32, #tpu.memory_space<vmem>>, %arg6: memref<8x1xf32, #tpu.memory_space<vmem>>, %arg7: memref<1x8x384xf32, #tpu.memory_space<vmem>>) attributes {dimension_semantics = [#tpu.dimension_semantics<parallel>], iteration_bounds = array<i64: 2>, scalar_prefetch = 0 : i64, scratch_operands = 0 : i64, tpu.core_type = #tpu.core_type<tc>, window_params = [{transform_indices = @transform_0, window_bounds = array<i64: 1, 8, 552>}, {pipeline_mode = #tpu.pipeline_mode<synchronous>, transform_indices = @transform_1, window_bounds = array<i64: 8, 8>}, {pipeline_mode = #tpu.pipeline_mode<synchronous>, transform_indices = @transform_2, window_bounds = array<i64: 3, 8, 72>}, {pipeline_mode = #tpu.pipeline_mode<synchronous>, transform_indices = @transform_3, window_bounds = array<i64: 8, 32>}, {pipeline_mode = #tpu.pipeline_mode<synchronous>, transform_indices = @transform_4, window_bounds = array<i64: 32, 1>}, {pipeline_mode = #tpu.pipeline_mode<synchronous>, transform_indices = @transform_5, window_bounds = array<i64: 8, 1>}, {transform_indices = @transform_6, window_bounds = array<i64: 1, 8, 384>}]} {
    %c0 = arith.constant 0 : index
    %c0_0 = arith.constant 0 : index
    %c0_1 = arith.constant 0 : index
    %0 = vector.load %arg1[%c0, %c0_0, %c0_1] : memref<1x8x552xf32, #tpu.memory_space<vmem>>, vector<1x8x552xf32>
    %1 = vector.shape_cast %0 : vector<1x8x552xf32> to vector<8x552xf32>
    %c0_2 = arith.constant 0 : index
    %c0_3 = arith.constant 0 : index
    %2 = vector.load %arg2[%c0_2, %c0_3] : memref<8x8xf32, #tpu.memory_space<vmem>>, vector<8x8xf32>
    %3 = vector.extract_strided_slice %1 {offsets = [0, 75], sizes = [8, 384], strides = [1, 1]} : vector<8x552xf32> to vector<8x384xf32>
    %cst = arith.constant dense<0.000000e+00> : vector<8x384xf32>
    %4 = tpu.matmul %2, %3, %cst {dimension_numbers = #tpu.dot_dimension_numbers<[1], [0], [0], [1], [0, 0, 1, 1], [], []>} : vector<8x8xf32>, vector<8x384xf32>, vector<8x384xf32> -> vector<8x384xf32>
    %5 = vector.extract_strided_slice %1 {offsets = [0, 50], sizes = [8, 384], strides = [1, 1]} : vector<8x552xf32> to vector<8x384xf32>
    %6 = vector.extract_strided_slice %1 {offsets = [0, 51], sizes = [8, 384], strides = [1, 1]} : vector<8x552xf32> to vector<8x384xf32>
    %7 = vector.extract_strided_slice %1 {offsets = [0, 52], sizes = [8, 384], strides = [1, 1]} : vector<8x552xf32> to vector<8x384xf32>
    %8 = vector.extract_strided_slice %1 {offsets = [0, 74], sizes = [8, 384], strides = [1, 1]} : vector<8x552xf32> to vector<8x384xf32>
    %9 = vector.extract_strided_slice %1 {offsets = [0, 75], sizes = [8, 384], strides = [1, 1]} : vector<8x552xf32> to vector<8x384xf32>
    %10 = vector.extract_strided_slice %1 {offsets = [0, 76], sizes = [8, 384], strides = [1, 1]} : vector<8x552xf32> to vector<8x384xf32>
    %11 = vector.extract_strided_slice %1 {offsets = [0, 98], sizes = [8, 384], strides = [1, 1]} : vector<8x552xf32> to vector<8x384xf32>
    %12 = vector.extract_strided_slice %1 {offsets = [0, 99], sizes = [8, 384], strides = [1, 1]} : vector<8x552xf32> to vector<8x384xf32>
    %13 = vector.extract_strided_slice %1 {offsets = [0, 100], sizes = [8, 384], strides = [1, 1]} : vector<8x552xf32> to vector<8x384xf32>
    %14 = tpu.concatenate %5, %6, %7, %8, %9, %10, %11, %12, %13 in 0 : vector<8x384xf32>, vector<8x384xf32>, vector<8x384xf32>, vector<8x384xf32>, vector<8x384xf32>, vector<8x384xf32>, vector<8x384xf32>, vector<8x384xf32>, vector<8x384xf32> -> vector<72x384xf32>
    %c0_4 = arith.constant 0 : index
    %c0_5 = arith.constant 0 : index
    %c0_6 = arith.constant 0 : index
    %15 = vector.load %arg3[%c0_4, %c0_5, %c0_6] : memref<3x8x72xf32, #tpu.memory_space<vmem>>, vector<1x8x72xf32>
    %16 = vector.shape_cast %15 : vector<1x8x72xf32> to vector<8x72xf32>
    %cst_7 = arith.constant dense<0.000000e+00> : vector<8x384xf32>
    %17 = tpu.matmul %16, %14, %cst_7 {dimension_numbers = #tpu.dot_dimension_numbers<[1], [0], [0], [1], [0, 0, 1, 1], [], []>} : vector<8x72xf32>, vector<72x384xf32>, vector<8x384xf32> -> vector<8x384xf32>
    %18 = vector.extract_strided_slice %1 {offsets = [0, 25], sizes = [8, 384], strides = [1, 1]} : vector<8x552xf32> to vector<8x384xf32>
    %19 = vector.extract_strided_slice %1 {offsets = [0, 27], sizes = [8, 384], strides = [1, 1]} : vector<8x552xf32> to vector<8x384xf32>
    %20 = vector.extract_strided_slice %1 {offsets = [0, 29], sizes = [8, 384], strides = [1, 1]} : vector<8x552xf32> to vector<8x384xf32>
    %21 = vector.extract_strided_slice %1 {offsets = [0, 73], sizes = [8, 384], strides = [1, 1]} : vector<8x552xf32> to vector<8x384xf32>
    %22 = vector.extract_strided_slice %1 {offsets = [0, 75], sizes = [8, 384], strides = [1, 1]} : vector<8x552xf32> to vector<8x384xf32>
    %23 = vector.extract_strided_slice %1 {offsets = [0, 77], sizes = [8, 384], strides = [1, 1]} : vector<8x552xf32> to vector<8x384xf32>
    %24 = vector.extract_strided_slice %1 {offsets = [0, 121], sizes = [8, 384], strides = [1, 1]} : vector<8x552xf32> to vector<8x384xf32>
    %25 = vector.extract_strided_slice %1 {offsets = [0, 123], sizes = [8, 384], strides = [1, 1]} : vector<8x552xf32> to vector<8x384xf32>
    %26 = vector.extract_strided_slice %1 {offsets = [0, 125], sizes = [8, 384], strides = [1, 1]} : vector<8x552xf32> to vector<8x384xf32>
    %27 = tpu.concatenate %18, %19, %20, %21, %22, %23, %24, %25, %26 in 0 : vector<8x384xf32>, vector<8x384xf32>, vector<8x384xf32>, vector<8x384xf32>, vector<8x384xf32>, vector<8x384xf32>, vector<8x384xf32>, vector<8x384xf32>, vector<8x384xf32> -> vector<72x384xf32>
    %c1 = arith.constant 1 : index
    %c0_8 = arith.constant 0 : index
    %c0_9 = arith.constant 0 : index
    %28 = vector.load %arg3[%c1, %c0_8, %c0_9] : memref<3x8x72xf32, #tpu.memory_space<vmem>>, vector<1x8x72xf32>
    %29 = vector.shape_cast %28 : vector<1x8x72xf32> to vector<8x72xf32>
    %cst_10 = arith.constant dense<0.000000e+00> : vector<8x384xf32>
    %30 = tpu.matmul %29, %27, %cst_10 {dimension_numbers = #tpu.dot_dimension_numbers<[1], [0], [0], [1], [0, 0, 1, 1], [], []>} : vector<8x72xf32>, vector<72x384xf32>, vector<8x384xf32> -> vector<8x384xf32>
    %31 = vector.extract_strided_slice %1 {offsets = [0, 0], sizes = [8, 384], strides = [1, 1]} : vector<8x552xf32> to vector<8x384xf32>
    %32 = vector.extract_strided_slice %1 {offsets = [0, 3], sizes = [8, 384], strides = [1, 1]} : vector<8x552xf32> to vector<8x384xf32>
    %33 = vector.extract_strided_slice %1 {offsets = [0, 6], sizes = [8, 384], strides = [1, 1]} : vector<8x552xf32> to vector<8x384xf32>
    %34 = vector.extract_strided_slice %1 {offsets = [0, 72], sizes = [8, 384], strides = [1, 1]} : vector<8x552xf32> to vector<8x384xf32>
    %35 = vector.extract_strided_slice %1 {offsets = [0, 75], sizes = [8, 384], strides = [1, 1]} : vector<8x552xf32> to vector<8x384xf32>
    %36 = vector.extract_strided_slice %1 {offsets = [0, 78], sizes = [8, 384], strides = [1, 1]} : vector<8x552xf32> to vector<8x384xf32>
    %37 = vector.extract_strided_slice %1 {offsets = [0, 144], sizes = [8, 384], strides = [1, 1]} : vector<8x552xf32> to vector<8x384xf32>
    %38 = vector.extract_strided_slice %1 {offsets = [0, 147], sizes = [8, 384], strides = [1, 1]} : vector<8x552xf32> to vector<8x384xf32>
    %39 = vector.extract_strided_slice %1 {offsets = [0, 150], sizes = [8, 384], strides = [1, 1]} : vector<8x552xf32> to vector<8x384xf32>
    %40 = tpu.concatenate %31, %32, %33, %34, %35, %36, %37, %38, %39 in 0 : vector<8x384xf32>, vector<8x384xf32>, vector<8x384xf32>, vector<8x384xf32>, vector<8x384xf32>, vector<8x384xf32>, vector<8x384xf32>, vector<8x384xf32>, vector<8x384xf32> -> vector<72x384xf32>
    %c2 = arith.constant 2 : index
    %c0_11 = arith.constant 0 : index
    %c0_12 = arith.constant 0 : index
    %41 = vector.load %arg3[%c2, %c0_11, %c0_12] : memref<3x8x72xf32, #tpu.memory_space<vmem>>, vector<1x8x72xf32>
    %42 = vector.shape_cast %41 : vector<1x8x72xf32> to vector<8x72xf32>
    %cst_13 = arith.constant dense<0.000000e+00> : vector<8x384xf32>
    %43 = tpu.matmul %42, %40, %cst_13 {dimension_numbers = #tpu.dot_dimension_numbers<[1], [0], [0], [1], [0, 0, 1, 1], [], []>} : vector<8x72xf32>, vector<72x384xf32>, vector<8x384xf32> -> vector<8x384xf32>
    %44 = tpu.concatenate %4, %17, %30, %43 in 0 : vector<8x384xf32>, vector<8x384xf32>, vector<8x384xf32>, vector<8x384xf32> -> vector<32x384xf32>
    %c0_14 = arith.constant 0 : index
    %c0_15 = arith.constant 0 : index
    %45 = vector.load %arg5[%c0_14, %c0_15] : memref<32x1xf32, #tpu.memory_space<vmem>>, vector<32x1xf32>
    %46 = vector.broadcast %45 : vector<32x1xf32> to vector<32x384xf32>
    %47 = arith.addf %44, %46 : vector<32x384xf32>
    %cst_16 = arith.constant 0.000000e+00 : f32
    %48 = vector.broadcast %cst_16 : f32 to vector<32x384xf32>
    %49 = arith.maximumf %47, %48 : vector<32x384xf32>
    %c0_17 = arith.constant 0 : index
    %c0_18 = arith.constant 0 : index
    %50 = vector.load %arg4[%c0_17, %c0_18] : memref<8x32xf32, #tpu.memory_space<vmem>>, vector<8x32xf32>
    %cst_19 = arith.constant dense<0.000000e+00> : vector<8x384xf32>
    %51 = tpu.matmul %50, %49, %cst_19 {dimension_numbers = #tpu.dot_dimension_numbers<[1], [0], [0], [1], [0, 0, 1, 1], [], []>} : vector<8x32xf32>, vector<32x384xf32>, vector<8x384xf32> -> vector<8x384xf32>
    %c0_20 = arith.constant 0 : index
    %c0_21 = arith.constant 0 : index
    %52 = vector.load %arg6[%c0_20, %c0_21] : memref<8x1xf32, #tpu.memory_space<vmem>>, vector<8x1xf32>
    %53 = vector.broadcast %52 : vector<8x1xf32> to vector<8x384xf32>
    %54 = arith.addf %51, %53 : vector<8x384xf32>
    %cst_22 = arith.constant 0.000000e+00 : f32
    %55 = vector.broadcast %cst_22 : f32 to vector<8x384xf32>
    %56 = arith.maximumf %54, %55 : vector<8x384xf32>
    %c0_23 = arith.constant 0 : index
    %c0_24 = arith.constant 0 : index
    %c0_25 = arith.constant 0 : index
    %57 = vector.load %arg7[%c0_23, %c0_24, %c0_25] : memref<1x8x384xf32, #tpu.memory_space<vmem>>, vector<1x8x384xf32>
    %58 = vector.shape_cast %57 : vector<1x8x384xf32> to vector<8x384xf32>
    %59 = vector.shape_cast %56 : vector<8x384xf32> to vector<1x8x384xf32>
    tpu.vector_store %arg7[%c0_23, %c0_24, %c0_25], %59 {strides = array<i32>} : memref<1x8x384xf32, #tpu.memory_space<vmem>>, vector<1x8x384xf32>,
    return
  }
  func.func @transform_0(%arg0: i32) -> (i32, i32, i32) {
    %c0_i32 = arith.constant 0 : i32
    %c0_i32_0 = arith.constant 0 : i32
    %c0_i32_1 = arith.constant 0 : i32
    return %arg0, %c0_i32, %c0_i32_0 : i32, i32, i32
  }
  func.func @transform_1(%arg0: i32) -> (i32, i32) {
    %c0_i32 = arith.constant 0 : i32
    %c0_i32_0 = arith.constant 0 : i32
    %c0_i32_1 = arith.constant 0 : i32
    return %c0_i32, %c0_i32_0 : i32, i32
  }
  func.func @transform_2(%arg0: i32) -> (i32, i32, i32) {
    %c0_i32 = arith.constant 0 : i32
    %c0_i32_0 = arith.constant 0 : i32
    %c0_i32_1 = arith.constant 0 : i32
    %c0_i32_2 = arith.constant 0 : i32
    return %c0_i32, %c0_i32_0, %c0_i32_1 : i32, i32, i32
  }
  func.func @transform_3(%arg0: i32) -> (i32, i32) {
    %c0_i32 = arith.constant 0 : i32
    %c0_i32_0 = arith.constant 0 : i32
    %c0_i32_1 = arith.constant 0 : i32
    return %c0_i32, %c0_i32_0 : i32, i32
  }
  func.func @transform_4(%arg0: i32) -> (i32, i32) {
    %c0_i32 = arith.constant 0 : i32
    %c0_i32_0 = arith.constant 0 : i32
    %c0_i32_1 = arith.constant 0 : i32
    return %c0_i32, %c0_i32_0 : i32, i32
  }
  func.func @transform_5(%arg0: i32) -> (i32, i32) {
    %c0_i32 = arith.constant 0 : i32
    %c0_i32_0 = arith.constant 0 : i32
    %c0_i32_1 = arith.constant 0 : i32
    return %c0_i32, %c0_i32_0 : i32, i32
  }
  func.func @transform_6(%arg0: i32) -> (i32, i32, i32) {
    %c0_i32 = arith.constant 0 : i32
    %c0_i32_0 = arith.constant 0 : i32
    %c0_i32_1 = arith.constant 0 : i32
    return %arg0, %c0_i32, %c0_i32_0 : i32, i32, i32
  }
}

</mosaic_0001>

<bundles_post_ra>
// kernel: _lambda_.1
= control target key start
LH: loop header
LB: loop body
LE: loop exit
PB: predicated region body
PF: predicated region fallthrough
CT: control target
= control target key end

     0   :  { %s1691_s21 = smov 0   ;;  %s2380_s0 = inlined_call_operand.vmem [shape: f32[2,8,552], index: 0, kind: input, shape index: {}]   ;;  %s2381_s1 = inlined_call_operand.vmem [shape: f32[8,8], index: 1, kind: input, shape index: {}]   ;;  %s2382_s2 = inlined_call_operand.vmem [shape: f32[3,8,72], index: 2, kind: input, shape index: {}]   ;;  %s2383_s3 = inlined_call_operand.vmem [shape: f32[8,32], index: 3, kind: input, shape index: {}]   ;;  %s2384_s4 = inlined_call_operand.vmem [shape: f32[32,1], index: 4, kind: input, shape index: {}]   ;;  %s2385_s5 = inlined_call_operand.vmem [shape: f32[8,1], index: 5, kind: input, shape index: {}]   ;;  %s2386_s6 = inlined_call_operand.vmem [shape: f32[2,8,384], index: 6, kind: output, shape index: {}]  }
   0x1 LB: > { %s1207_s22 = sadd.s32 4294967295, %s1632_s21   ;;  %p1211_p0 = scmp.ge.s32.totalorder %s1632_s21, 1  ;;  %s1632_s21 = sphi %s1691_s21, %s16_s21  }
   0x2   : > { %p212_p1 = scmp.lt.s32.totalorder %s1632_s21, 3 }
   0x4   : > { %p213_p2 = pnand %p1211_p0, %p212_p1 }
   0x5   : > { %p242_p3 = scmp.lt.s32.totalorder (!%p213_p2), %s1207_s22, 1  ;;  %s1634_s27 = smov (!%p213_p2), 127  }
   0x6   : > { %216 = sbr.rel (%p213_p2) target bundleno = 688 (0x2b0), region = 44  ;;  %s1635_s28 = smov (!%p213_p2), 53  }
   0x7   : > { %s1636_s29 = smov (!%p213_p2), 126   ;;  %s1637_s30 = smov (!%p213_p2), 104  }
   0x8   : > { %s1638_s7 = smov (!%p213_p2), 103   ;;  %s1639_s8 = smov (!%p213_p2), 102  }
   0x9   : > { %s1640_s9 = smov (!%p213_p2), 80   ;;  %s1641_s10 = smov (!%p213_p2), 78  }
   0xa   : > { %s1642_s11 = smov (!%p213_p2), 79   ;;  %s1643_s12 = smov (!%p213_p2), 28  }
   0xb   : > { %s2389_s22 = smov (!%p242_p3, %s1207_s22), 1  ;;  %s1644_s13 = smov 30   ;;  %vm270_vm0 = vcmask 433152   ;;  %vm349_vm1 = vcmask 1039360   ;;  %vm373_vm2 = vcmask 850944   ;;  %vm361_vm3 = vcmask 1031168  }
   0xc   : > { %s1233_s23 = smul.u32 40, %s2389_s22  ;;  %s1645_s14 = smov 32   ;;  %vm409_vm4 = vcmask 654336   ;;  %vm433_vm5 = vcmask 637952   ;;  %vm421_vm6 = vcmask 646144   ;;  %vm397_vm7 = vcmask 834560  }
   0xd   : > { %s1646_s15 = smov 76   ;;  %s1647_s16 = smov 124   ;;  %vm385_vm8 = vcmask 842752   ;;  %vm673_vm9 = vcmask 228352   ;;  %vm661_vm10 = vcmask 244736   ;;  %vm649_vm11 = vcmask 261120  }
   0xe   : > { %s1705_s26 = scalar_lea.vmem %s2380_s0, %s1233_s23  ;;  %s1648_s17 = smov 106   ;;  %vm637_vm12 = vcmask 621568   ;;  %vm625_vm13 = vcmask 1014784   ;;  %vm553_vm14 = vcmask 588800   ;;  %vm277_vm15 = vcmask 64512  }
   0xf   : > { %v1708_v0 = vld [vmem:[%s1705_s26] sm:$0xff]  ;;  %v1711_v1 = vld [vmem:[%s1705_s26 + $0x8] sm:$0xff]  ;;  %v1716_v3 = vld [vmem:[%s1705_s26 + $0x10] sm:$0xff]  ;;  %s1649_s18 = smov 109   ;;  %s1650_s19 = smov 112  }
  0x10   : > { %v1275_v2 = vpack.i.bf16 %v1711_v1, %v1708_v0  ;;  %v255_v4 = vld [vmem:[%s1705_s26 + $0x18] sm:$0xff]  ;;  %v1355_v7 = vpack.i.bf16 %v1716_v3, %v1711_v1  ;;  %v256_v10 = vld [vmem:[%s1705_s26 + $0x20] sm:$0xff]  ;;  %s1651_s20 = smov 50   ;;  %s1652_s23 = smov 122  }
  0x11   : > { %v1720_v5 = vpack.i.bf16 %v255_v4, %v1716_v3  ;;  %v1360_v6 = vpack.i.bf16 %v1708_v0, %v255_v4  ;;  %v1743_v11 = vpack.i.bf16 %v256_v10, %v255_v4  ;;  %s1653_s24 = smov 56   ;;  %s1654_s25 = smov 125  }
  0x12   : > { %1276 = vrot.lane.b32.xlu1 %v1275_v2, %s1634_s27  ;;  %1266 = vrot.lane.b32.xlu0 %v1275_v2, %s1635_s28 }
  0x13   : > { %1286 = vrot.lane.b32.xlu2 %v1275_v2, %s1636_s29 }
  0x1a   : > { %1281 = vrot.lane.b32.xlu1 %v1720_v5, %s1634_s27  ;;  %1271 = vrot.lane.b32.xlu0 %v1720_v5, %s1635_s28 }
  0x1b   : > { %1291 = vrot.lane.b32.xlu2 %v1720_v5, %s1636_s29 }
  0x22   : > { %1301 = vrot.lane.b32.xlu1 %v1720_v5, %s1637_s30  ;;  %1296 = vrot.lane.b32.xlu0 %v1275_v2, %s1637_s30 }
  0x23   : > { %1306 = vrot.lane.b32.xlu2 %v1275_v2, %s1638_s7 }
  0x2a   : > { %1316 = vrot.lane.b32.xlu1 %v1275_v2, %s1639_s8  ;;  %1311 = vrot.lane.b32.xlu0 %v1720_v5, %s1638_s7 }
  0x2b   : > { %1321 = vrot.lane.b32.xlu2 %v1720_v5, %s1639_s8 }
  0x32   : > { %1331 = vrot.lane.b32.xlu1 %v1720_v5, %s1640_s9  ;;  %1326 = vrot.lane.b32.xlu0 %v1275_v2, %s1640_s9 }
  0x33   : > { %1336 = vrot.lane.b32.xlu2 %v1275_v2, %s1641_s10 }
  0x3a   : > { %1346 = vrot.lane.b32.xlu1 %v1275_v2, %s1642_s11  ;;  %1341 = vrot.lane.b32.xlu0 %v1720_v5, %s1641_s10 }
  0x3b   : > { %1351 = vrot.lane.b32.xlu2 %v1720_v5, %s1642_s11 }
  0x42   : > { %1361 = vrot.lane.b32.xlu1 %v1360_v6, %s1643_s12  ;;  %1356 = vrot.lane.b32.xlu0 %v1355_v7, %s1643_s12 }
  0x43   : > { %1366 = vrot.lane.b32.xlu2 %v1355_v7, %s1644_s13 }
  0x4a   : > { %1376 = vrot.lane.b32.xlu1 %v1355_v7, %s1645_s14  ;;  %1371 = vrot.lane.b32.xlu0 %v1360_v6, %s1644_s13 }
  0x4b   : > { %1381 = vrot.lane.b32.xlu2 %v1360_v6, %s1645_s14 }
  0x52   : > { %1391 = vrot.lane.b32.xlu1 %v1360_v6, %s1646_s15  ;;  %1386 = vrot.lane.b32.xlu0 %v1355_v7, %s1646_s15 }
  0x53   : > { %1396 = vrot.lane.b32.xlu2 %v1355_v7, %s1647_s16 }
  0x5a   : > { %1401 = vrot.lane.b32.xlu0 %v1360_v6, %s1647_s16  ;;  %1406 = vrot.lane.b32.xlu1 %v1743_v11, %s1648_s17 }
  0x62   : > { %1411 = vrot.lane.b32.xlu1 %v1743_v11, %s1649_s18 }
  0x6d   : > { %v1738_v8 = vpop.permute.xlu2 %1286 }
  0x75   : > { %v1740_v9 = vpop.permute.xlu2 %1291 }
  0x76   : > { %v1758_v18 = vunpack.i.h.bf16 %v1740_v9  ;;  %v1293_v38 = vunpack.i.l.bf16 %v1740_v9 }
  0x78   : > { %v1796_v42 = vsel %vm361_vm3, %v1293_v38, %v1758_v18 }
  0x7d   : > { %v1753_v17 = vpop.permute.xlu2 %1306 }
  0x7e   : > { %v1309_v7 = vunpack.i.h.bf16 %v1753_v17  ;;  %v1308_v10 = vunpack.i.l.bf16 %v1753_v17 }
  0x84   : > { %v1747_v12 = vpop.permute.xlu1 %1276  ;;  %v1267_v13 = vpop.permute.xlu0 %1266 }
  0x85   : > { %v1269_v14 = vunpack.i.h.bf16 %v1267_v13  ;;  %v1268_v15 = vunpack.i.l.bf16 %v1267_v13  ;;  %v1778_v29 = vpop.permute.xlu2 %1321 }
  0x86   : > { %v1324_v32 = vunpack.i.h.bf16 %v1778_v29 }
  0x87   : > { %v1750_v16 = vsel %vm270_vm0, %v1268_v15, %v1269_v14 }
  0x88   : > { %296 = vmatpush.msra.mxu0 %v1750_v16 }
  0x8c   : > { %v1760_v19 = vpop.permute.xlu1 %1281  ;;  %v1272_v20 = vpop.permute.xlu0 %1271 }
  0x8d   : > { %v1284_v21 = vunpack.i.h.bf16 %v1760_v19  ;;  %v1283_v22 = vunpack.i.l.bf16 %v1760_v19  ;;  %v1274_v23 = vunpack.i.h.bf16 %v1272_v20  ;;  %v1273_v24 = vunpack.i.l.bf16 %v1272_v20  ;;  %v1337_v44 = vpop.permute.xlu2 %1336 }
  0x8e   : > { %v1339_v55 = vunpack.i.h.bf16 %v1337_v44  ;;  %v1338_v56 = vunpack.i.l.bf16 %v1337_v44 }
  0x8f   : > { %v1765_v25 = vpack.i.bf16 %v1284_v21, %v1758_v18  ;;  %v1768_v26 = vsel %vm270_vm0, %v1269_v14, %v1273_v24  ;;  %v1771_v27 = vsel %vm270_vm0, %v1273_v24, %v1274_v23  ;;  %v352_v28 = vsel %vm349_vm1, %v1283_v22, %v1284_v21 }
  0x90   : > { %316 = vmatpush.msra.mxu1 %v1768_v26  ;;  %336 = vmatpush.msra.mxu2 %v1771_v27  ;;  %v1831_v13 = vsel %vm433_vm5, %v1338_v56, %v1339_v55  ;;  %v1323_v23 = vunpack.i.l.bf16 %v1778_v29  ;;  %v1535_v29 = vpack.i.bf16 %v1711_v1, %v1716_v3  ;;  %vm956_vm0 = vcmask 867328  }
  0x94   : > { %v1302_v30 = vpop.permute.xlu1 %1301  ;;  %v1297_v31 = vpop.permute.xlu0 %1296 }
  0x95   : > { %v1304_v33 = vunpack.i.h.bf16 %v1302_v30  ;;  %v1303_v34 = vunpack.i.l.bf16 %v1302_v30  ;;  %v1299_v52 = vunpack.i.h.bf16 %v1297_v31  ;;  %v1298_v53 = vunpack.i.l.bf16 %v1297_v31  ;;  %v1816_v57 = vpop.permute.xlu2 %1351 }
  0x96   : > { %v1353_v58 = vunpack.i.l.bf16 %v1816_v57 }
  0x97   : > { %v1781_v35 = vpack.i.bf16 %v1304_v33, %v352_v28  ;;  %v376_v36 = vsel %vm373_vm2, %v1303_v34, %v1304_v33  ;;  %v374_v61 = vsel %vm373_vm2, %v1298_v53, %v1299_v52  ;;  %v375_v62 = vsel %vm373_vm2, %v1299_v52, %v1303_v34 }
  0x98   : > { %v1786_v37 = vpack.i.bf16 %v1324_v32, %v376_v36  ;;  %v1440_v28 = vpack.i.bf16 %v375_v62, %v374_v61  ;;  %v1289_v53 = vunpack.i.h.bf16 %v1738_v8  ;;  %vm926_vm2 = vcmask 916480  }
  0x9c   : > { %v1317_v39 = vpop.permute.xlu1 %1316  ;;  %v1789_v40 = vpop.permute.xlu0 %1311 }
  0x9d   : > { %v1314_v41 = vunpack.i.h.bf16 %v1789_v40  ;;  %v1319_v30 = vunpack.i.h.bf16 %v1317_v39  ;;  %v1318_v31 = vunpack.i.l.bf16 %v1317_v39  ;;  %v1313_v33 = vunpack.i.l.bf16 %v1789_v40  ;;  %v1870_v52 = vpop.permute.xlu2 %1366 }
  0x9e   : > { %v1368_v61 = vunpack.i.l.bf16 %v1870_v52 }
  0x9f   : > { %v1801_v43 = vpack.i.bf16 %v1314_v41, %v1796_v42  ;;  %v399_v39 = vsel %vm397_vm7, %v1319_v30, %v1323_v23 }
  0xa4   : > { %v1803_v45 = vpop.permute.xlu1 %1331  ;;  %v1327_v46 = vpop.permute.xlu0 %1326 }
  0xa5   : > { %v1333_v47 = vunpack.i.l.bf16 %v1803_v45  ;;  %v1329_v48 = vunpack.i.h.bf16 %v1327_v46  ;;  %v1328_v49 = vunpack.i.l.bf16 %v1327_v46  ;;  %v1834_v14 = vunpack.i.h.bf16 %v1803_v45 }
  0xa6   : > { %v398_v46 = vsel %vm397_vm7, %v1318_v31, %v1319_v30 }
  0xa7   : > { %v1807_v50 = vsel %vm409_vm4, %v1328_v49, %v1329_v48  ;;  %v1812_v51 = vsel %vm409_vm4, %v1329_v48, %v1333_v47  ;;  %v1863_v48 = vsel %vm385_vm8, %v1308_v10, %v1309_v7  ;;  %v1868_v49 = vsel %vm385_vm8, %v1309_v7, %v1313_v33 }
  0xa8   : > { %v1425_v54 = vpack.i.bf16 %v1812_v51, %v1807_v50  ;;  %v1430_v56 = vpack.i.bf16 %v399_v39, %v398_v46  ;;  %v1382_v46 = vpop.permute.xlu2 %1381  ;;  %v1525_v45 = vpack.i.bf16 %v1807_v50, %v1831_v13  ;;  %v1970_v50 = vsel %vm385_vm8, %v1313_v33, %v1314_v41 }
  0xaa   : > { %1426 = vrot.lane.b32.xlu0 %v1425_v54, %s1641_s10  ;;  %v1288_v54 = vunpack.i.l.bf16 %v1738_v8 }
  0xac   : > { %v1347_v59 = vpop.permute.xlu1 %1346  ;;  %v1820_v60 = vpop.permute.xlu0 %1341  ;;  %v362_v7 = vsel %vm361_vm3, %v1288_v54, %v1289_v53  ;;  %v1279_v54 = vunpack.i.h.bf16 %v1747_v12 }
  0xad   : > { %v1349_v63 = vunpack.i.h.bf16 %v1347_v59  ;;  %v1348_v2 = vunpack.i.l.bf16 %v1347_v59  ;;  %v1825_v4 = vunpack.i.h.bf16 %v1820_v60  ;;  %v1343_v6 = vunpack.i.l.bf16 %v1820_v60 }
  0xae   : > { %v1435_v59 = vpack.i.bf16 %v1868_v49, %v1863_v48 }
  0xaf   : > { %v422_v15 = vsel %vm421_vm6, %v1348_v2, %v1349_v63  ;;  %v423_v20 = vsel %vm421_vm6, %v1349_v63, %v1353_v58  ;;  %v1843_v21 = vsel %vm433_vm5, %v1339_v55, %v1343_v6  ;;  %v1369_v55 = vunpack.i.h.bf16 %v1870_v52 }
  0xb0   : > { %v1420_v17 = vpack.i.bf16 %v423_v20, %v422_v15  ;;  %v1415_v24 = vpack.i.bf16 %v1843_v21, %v1831_v13  ;;  %v1889_v15 = vsel %vm361_vm3, %v1289_v53, %v1293_v38  ;;  %v1383_v53 = vunpack.i.l.bf16 %v1382_v46 }
  0xb1   : > { %v1450_v31 = vpack.i.bf16 %v1889_v15, %v362_v7  ;;  %vm910_vm3 = vcmask 408576  }
  0xb2   : > { %1421 = vrot.lane.b32.xlu2 %v1420_v17, %s1641_s10  ;;  %1416 = vrot.lane.b32.xlu1 %v1415_v24, %s1641_s10 }
  0xb3   : > { %1441 = vrot.lane.b32.xlu0 %v1440_v28, %s1641_s10  ;;  %v663_v28 = vsel %vm661_vm10, %v1368_v61, %v1369_v55 }
  0xb4   : > { %v1854_v36 = vpop.permute.xlu1 %1361  ;;  %v1856_v44 = vpop.permute.xlu0 %1356 }
  0xb5   : > { %v1363_v62 = vunpack.i.l.bf16 %v1854_v36  ;;  %v1359_v63 = vunpack.i.h.bf16 %v1856_v44  ;;  %v1358_v2 = vunpack.i.l.bf16 %v1856_v44 }
  0xb7   : > { %v675_v17 = vsel %vm673_vm9, %v1358_v2, %v1359_v63  ;;  %v676_v24 = vsel %vm673_vm9, %v1359_v63, %v1363_v62  ;;  %v351_v63 = vsel %vm349_vm1, %v1279_v54, %v1283_v22  ;;  %v1364_v22 = vunpack.i.h.bf16 %v1854_v36 }
  0xb8   : > { %v1445_v39 = vpack.i.bf16 %v676_v24, %v675_v17 }
  0xba   : > { %1431 = vrot.lane.b32.xlu1 %v1430_v56, %s1641_s10  ;;  %1436 = vrot.lane.b32.xlu2 %v1435_v59, %s1641_s10  ;;  %v1278_v56 = vunpack.i.l.bf16 %v1747_v12 }
  0xbc   : > { %v1883_v8 = vpop.permute.xlu1 %1376  ;;  %v1372_v10 = vpop.permute.xlu0 %1371  ;;  %v350_v12 = vsel %vm349_vm1, %v1278_v56, %v1279_v54  ;;  %v674_v56 = vsel %vm673_vm9, %v1364_v22, %v1358_v2  ;;  %vm941_vm1 = vcmask 891904  }
  0xbd   : > { %v1373_v20 = vunpack.i.l.bf16 %v1372_v10  ;;  %v1379_v9 = vunpack.i.h.bf16 %v1883_v8  ;;  %v1378_v38 = vunpack.i.l.bf16 %v1883_v8  ;;  %v1374_v34 = vunpack.i.h.bf16 %v1372_v10 }
  0xbe   : > { %v1930_v10 = vsel %vm433_vm5, %v1343_v6, %v1825_v4 }
  0xbf   : > { %v1896_v30 = vpack.i.bf16 %v362_v7, %v1373_v20  ;;  %v664_v44 = vsel %vm661_vm10, %v1369_v55, %v1373_v20  ;;  %v651_v8 = vsel %vm649_vm11, %v1378_v38, %v1379_v9  ;;  %v652_v24 = vsel %vm649_vm11, %v1379_v9, %v1383_v53 }
  0xc0   : > { %v1455_v52 = vpack.i.bf16 %v664_v44, %v663_v28  ;;  %v1465_v19 = vpack.i.bf16 %v652_v24, %v651_v8  ;;  %v1354_v9 = vunpack.i.h.bf16 %v1816_v57  ;;  %v1397_v8 = vpop.permute.xlu2 %1396  ;;  %v1384_v24 = vunpack.i.h.bf16 %v1382_v46 }
  0xc2   : > { %1446 = vrot.lane.b32.xlu1 %v1445_v39, %s1638_s7  ;;  %1451 = vrot.lane.b32.xlu2 %v1450_v31, %s1641_s10  ;;  %v1460_v39 = vpack.i.bf16 %v351_v63, %v350_v12  ;;  %v662_v63 = vsel %vm661_vm10, %v1374_v34, %v1368_v61  ;;  %v1398_v12 = vunpack.i.l.bf16 %v1397_v8  ;;  %v650_v6 = vsel %vm649_vm11, %v1384_v24, %v1378_v38 }
  0xc3   : > { %1456 = vrot.lane.b32.xlu0 %v1455_v52, %s1638_s7  ;;  %v1485_v57 = vpack.i.bf16 %v662_v63, %v1930_v10 }
  0xc4   : > { %v1392_v55 = vpop.permute.xlu1 %1391  ;;  %v1387_v59 = vpop.permute.xlu0 %1386 }
  0xc5   : > { %v1393_v7 = vunpack.i.l.bf16 %v1392_v55  ;;  %v1389_v20 = vunpack.i.h.bf16 %v1387_v59  ;;  %v1388_v17 = vunpack.i.l.bf16 %v1387_v59  ;;  %v424_v59 = vsel %vm421_vm6, %v1353_v58, %v1354_v9 }
  0xc6   : > { %v1480_v2 = vpack.i.bf16 %v424_v59, %v1930_v10  ;;  %v1399_v58 = vunpack.i.h.bf16 %v1397_v8  ;;  %v1394_v46 = vunpack.i.h.bf16 %v1392_v55  ;;  %v1540_v55 = vpack.i.bf16 %v1834_v14, %v1970_v50 }
  0xc7   : > { %v1912_v28 = vpack.i.bf16 %v1393_v7, %v1383_v53  ;;  %v639_v31 = vsel %vm637_vm12, %v1388_v17, %v1389_v20  ;;  %v640_v44 = vsel %vm637_vm12, %v1389_v20, %v1393_v7  ;;  %v1475_v20 = vpack.i.bf16 %v1843_v21, %v674_v56 }
  0xc8   : > { %v1470_v52 = vpack.i.bf16 %v640_v44, %v639_v31  ;;  %v627_v60 = vsel %vm625_vm13, %v1398_v12, %v1399_v58  ;;  %v638_v38 = vsel %vm637_vm12, %v1394_v46, %v1388_v17  ;;  %v1520_v17 = vpack.i.bf16 %v1796_v42, %v1889_v15 }
  0xc9   : > { %v1495_v61 = vpack.i.bf16 %v627_v60, %v650_v6  ;;  %vm880_vm6 = vcmask 998400  }
  0xca   : > { %1461 = vrot.lane.b32.xlu1 %v1460_v39, %s1641_s10  ;;  %1466 = vrot.lane.b32.xlu2 %v1465_v19, %s1638_s7 }
  0xcb   : > { %1471 = vrot.lane.b32.xlu0 %v1470_v52, %s1638_s7 }
  0xcc   : > { %v1402_v53 = vpop.permute.xlu0 %1401  ;;  %v2003_v42 = vpop.permute.xlu1 %1406 }
  0xcd   : > { %v1403_v54 = vunpack.i.l.bf16 %v1402_v53 }
  0xcf   : > { %v1934_v7 = vpack.i.bf16 %v1758_v18, %v1403_v54  ;;  %v412_v18 = vsel %vm409_vm4, %v1333_v47, %v1834_v14  ;;  %v628_v31 = vsel %vm625_vm13, %v1399_v58, %v1403_v54  ;;  %vm895_vm4 = vcmask 457728  }
  0xd0   : > { %v1490_v34 = vpack.i.bf16 %v412_v18, %v1812_v51  ;;  %v1500_v47 = vpack.i.bf16 %v1825_v4, %v412_v18  ;;  %v1505_v44 = vpack.i.bf16 %v638_v38, %v628_v31 }
  0xd2   : > { %1476 = vrot.lane.b32.xlu1 %v1475_v20, %s1638_s7  ;;  %1481 = vrot.lane.b32.xlu2 %v1480_v2, %s1641_s10 }
  0xd3   : > { %1486 = vrot.lane.b32.xlu0 %v1485_v57, %s1638_s7 }
  0xda   : > { %1511 = vrot.lane.b32.xlu1 %v1743_v11, %s1650_s19  ;;  %1491 = vrot.lane.b32.xlu2 %v1490_v34, %s1638_s7  ;;  %v400_v11 = vsel %vm397_vm7, %v1323_v23, %v1324_v32  ;;  %v1404_v32 = vunpack.i.h.bf16 %v1402_v53  ;;  %v2387_v23 = vpack.i.bf16 %v1834_v14, %v1825_v4  ;;  %vm865_vm7 = vcmask 1022976  }
  0xdb   : > { %1496 = vrot.lane.b32.xlu0 %v1495_v61, %s1638_s7  ;;  %v1515_v51 = vpack.i.bf16 %v1354_v9, %v400_v11 }
  0xdc   : > { %v626_v40 = vsel %vm625_vm13, %v1404_v32, %v1398_v12 }
  0xdd   : > { %v1545_v41 = vpack.i.bf16 %v626_v40, %v1363_v62 }
  0xe2   : > { %1526 = vrot.lane.b32.xlu1 %v1525_v45, %s1638_s7  ;;  %1501 = vrot.lane.b32.xlu2 %v1500_v47, %s1641_s10 }
  0xe3   : > { %1506 = vrot.lane.b32.xlu0 %v1505_v44, %s1638_s7 }
  0xea   : > { %1541 = vrot.lane.b32.xlu1 %v1540_v55, %s1641_s10  ;;  %1516 = vrot.lane.b32.xlu2 %v1515_v51, %s1641_s10 }
  0xeb   : > { %1521 = vrot.lane.b32.xlu0 %v1520_v17, %s1638_s7 }
  0xf2   : > { %1556 = vrot.lane.b32.xlu1 %v1786_v37, %s1641_s10  ;;  %1531 = vrot.lane.b32.xlu2 %v1720_v5, %s1651_s20  ;;  %v1590_v37 = vpack.i.bf16 %v1708_v0, %v1711_v1 }
  0xf3   : > { %1536 = vrot.lane.b32.xlu0 %v1535_v29, %s1648_s17 }
  0xfa   : > { %1571 = vrot.lane.b32.xlu1 %v1535_v29, %s1650_s19  ;;  %1546 = vrot.lane.b32.xlu2 %v1545_v41, %s1638_s7 }
  0xfb   : > { %1551 = vrot.lane.b32.xlu0 %v1535_v29, %s1649_s18 }
 0x102   : > { %1586 = vrot.lane.b32.xlu1 %v1720_v5, %s1652_s23  ;;  %1561 = vrot.lane.b32.xlu2 %v1896_v30, %s1638_s7 }
 0x103   : > { %1566 = vrot.lane.b32.xlu0 %v1720_v5, %s1653_s24 }
 0x10a   : > { %1601 = vrot.lane.b32.xlu1 %v1720_v5, %s1654_s25  ;;  %1576 = vrot.lane.b32.xlu2 %v1801_v43, %s1641_s10  ;;  %v2014_v43 = vpop.permute.xlu1 %1411 }
 0x10b   : > { %1581 = vrot.lane.b32.xlu0 %v1912_v28, %s1638_s7 }
 0x10c   : > { %v1422_v3 = vpop.permute.xlu2 %1421 }
 0x10d   : > { %v1424_v62 = vunpack.i.h.bf16 %v1422_v3  ;;  %v1423_v15 = vunpack.i.l.bf16 %v1422_v3 }
 0x10f   : > { %v520_v19 = vsel %vm433_vm5, %v1423_v15, %v1424_v62 }
 0x112   : > { %889 = vrot.lane.b32.xlu1 %v1711_v1, %s1653_s24  ;;  %1591 = vrot.lane.b32.xlu2 %v1590_v37, %s1651_s20 }
 0x113   : > { %1596 = vrot.lane.b32.xlu0 %v1781_v35, %s1641_s10 }
 0x114   : > { %v2009_v5 = vpop.permute.xlu2 %1436 }
 0x115   : > { %v1439_v22 = vunpack.i.h.bf16 %v2009_v5  ;;  %v1438_v9 = vunpack.i.l.bf16 %v2009_v5 }
 0x117   : > { %v511_v58 = vsel %vm433_vm5, %v1438_v9, %v1439_v22 }
 0x11a   : > { %859 = vrot.lane.b32.xlu1 %v1711_v1, %s1654_s25  ;;  %1606 = vrot.lane.b32.xlu2 %v1765_v25, %s1641_s10 }
 0x11b   : > { %1611 = vrot.lane.b32.xlu0 %v2387_v23, %s1638_s7 }
 0x11c   : > { %v2020_v33 = vpop.permute.xlu2 %1451  ;;  %v1427_v36 = vpop.permute.xlu0 %1426 }
 0x11d   : > { %v1429_v4 = vunpack.i.h.bf16 %v1427_v36  ;;  %v1428_v14 = vunpack.i.l.bf16 %v1427_v36  ;;  %v1454_v57 = vunpack.i.h.bf16 %v2020_v33  ;;  %v1453_v24 = vunpack.i.l.bf16 %v2020_v33  ;;  %v2104_v36 = vld [vmem:[%s2382_s2] sm:$0xff] }
 0x11f   : > { %v517_v52 = vsel %vm433_vm5, %v1428_v14, %v1429_v4  ;;  %v505_v61 = vsel %vm433_vm5, %v1453_v24, %v1454_v57 }
 0x122   : > { %857 = vrot.lane.b32.xlu1 %v1708_v0, %s1654_s25  ;;  %874 = vrot.lane.b32.xlu2 %v1711_v1, %s1652_s23 }
 0x123   : > { %1616 = vrot.lane.b32.xlu0 %v1934_v7, %s1638_s7 }
 0x124   : > { %v1417_v35 = vpop.permute.xlu1 %1416  ;;  %v2027_v25 = vpop.permute.xlu2 %1466 }
 0x125   : > { %v1419_v30 = vunpack.i.h.bf16 %v1417_v35  ;;  %v1418_v28 = vunpack.i.l.bf16 %v1417_v35  ;;  %v2033_v1 = vpop.permute.xlu0 %1441  ;;  %v1469_v3 = vunpack.i.h.bf16 %v2027_v25  ;;  %v1468_v37 = vunpack.i.l.bf16 %v2027_v25 }
 0x126   : > { %v1443_v7 = vunpack.i.l.bf16 %v2033_v1 }
 0x127   : > { %v523_v39 = vsel %vm433_vm5, %v1418_v28, %v1419_v30 }
 0x128   : > { %564 = vmatpush.msra.mxu3 %v523_v39 }
 0x12a   : > { %565 = vmatpush.msra.mxu3 %v520_v19  ;;  %887 = vrot.lane.b32.xlu2 %v1708_v0, %s1653_s24  ;;  %s1234_s24 = smul.u32 24, %s2389_s22 }
 0x12b   : > { %872 = vrot.lane.b32.xlu0 %v1708_v0, %s1652_s23  ;;  %v1444_v0 = vunpack.i.h.bf16 %v2033_v1 }
 0x12c   : > { %v2040_v53 = vpop.permute.xlu1 %1431  ;;  %566 = vmatpush.msra.mxu3 %v517_v52  ;;  %v2042_v54 = vpop.permute.xlu2 %1481  ;;  %s251_s28 = scalar_lea.vmem %s2386_s6, %s1234_s24 }
 0x12d   : > { %v1434_v56 = vunpack.i.h.bf16 %v2040_v53  ;;  %v1433_v59 = vunpack.i.l.bf16 %v2040_v53  ;;  %v1484_v63 = vunpack.i.h.bf16 %v2042_v54  ;;  %v1483_v8 = vunpack.i.l.bf16 %v2042_v54  ;;  %v257_v53 = vld [vmem:[%s2381_s1] sm:$0xff] }
 0x12e   : > { %v508_v18 = vsel %vm433_vm5, %v1443_v7, %v1444_v0  ;;  %1216 = vmatmul.msk.f32.vlgmr.msra.gmra.mxu2 %vm277_vm15, %v257_v53  ;;  %1214 = vmatmul.msk.f32.vlgmr.msra.gmra.mxu0 %vm277_vm15, %v257_v53 }
 0x12f   : > { %v514_v20 = vsel %vm433_vm5, %v1433_v59, %v1434_v56  ;;  %v524_v2 = vsel %vm433_vm5, %v1419_v30, %v1483_v8  ;;  %v521_v12 = vsel %vm433_vm5, %v1424_v62, %v1484_v63  ;;  %v759_v59 = vsel %vm385_vm8, %v1468_v37, %v1469_v3  ;;  %1215 = vmatmul.msk.f32.vlgmr.msra.gmra.mxu1 %vm277_vm15, %v257_v53 }
 0x130   : > { %567 = vmatpush.msra.mxu3 %v514_v20  ;;  %584 = vmatpush.msrb.mxu0 %v524_v2 }
 0x132   : > { %568 = vmatpush.msra.mxu3 %v511_v58  ;;  %585 = vmatpush.msrb.mxu0 %v521_v12 }
 0x134   : > { %v2065_v60 = vpop.permute.xlu1 %1446  ;;  %v2067_v6 = vpop.permute.xlu2 %1491  ;;  %569 = vmatpush.msra.mxu3 %v508_v18 }
 0x135   : > { %v2069_v34 = vpop.permute.xlu0 %1456  ;;  %v1449_v51 = vunpack.i.h.bf16 %v2065_v60  ;;  %v1448_v55 = vunpack.i.l.bf16 %v2065_v60  ;;  %v1494_v2 = vunpack.i.h.bf16 %v2067_v6  ;;  %v1493_v24 = vunpack.i.l.bf16 %v2067_v6 }
 0x136   : > { %570 = vmatpush.msra.mxu3 %v505_v61  ;;  %v1459_v40 = vunpack.i.h.bf16 %v2069_v34  ;;  %v1458_v41 = vunpack.i.l.bf16 %v2069_v34 }
 0x137   : > { %v765_v23 = vsel %vm385_vm8, %v1448_v55, %v1449_v51  ;;  %v750_v18 = vsel %vm385_vm8, %v1493_v24, %v1494_v2 }
 0x13c   : > { %v2074_v46 = vpop.permute.xlu1 %1461  ;;  %v2076_v31 = vpop.permute.xlu2 %1501 }
 0x13d   : > { %v1464_v45 = vunpack.i.h.bf16 %v2074_v46  ;;  %v1463_v47 = vunpack.i.l.bf16 %v2074_v46  ;;  %v1504_v38 = vunpack.i.h.bf16 %v2076_v31  ;;  %v1503_v44 = vunpack.i.l.bf16 %v2076_v31  ;;  %v2082_v11 = vpop.permute.xlu0 %1471 }
 0x13e   : > { %v1474_v35 = vunpack.i.h.bf16 %v2082_v11  ;;  %v1473_v62 = vunpack.i.l.bf16 %v2082_v11 }
 0x13f   : > { %v502_v17 = vsel %vm433_vm5, %v1463_v47, %v1464_v45  ;;  %v518_v29 = vsel %vm433_vm5, %v1429_v4, %v1503_v44  ;;  %v525_v32 = vsel %vm433_vm5, %v1483_v8, %v1504_v38 }
 0x140   : > { %571 = vmatpush.msra.mxu3 %v502_v17  ;;  %586 = vmatpush.msrb.mxu0 %v518_v29  ;;  %v756_v58 = vsel %vm385_vm8, %v1473_v62, %v1474_v35 }
 0x141   : > { %604 = vmatpush.msrb.mxu1 %v525_v32 }
 0x142   : > { %572 = vmatpush.msra.mxu3 %v1831_v13  ;;  %v762_v13 = vsel %vm385_vm8, %v1458_v41, %v1459_v40 }
 0x143   : > { %1217 = vmatmul.msk.f32.vlgmr.msra.gmra.mxu3 %vm553_vm14, %v2104_v36 }
 0x144   : > { %824 = vmatpush.msrb.mxu3 %v765_v23  ;;  %v1477_v15 = vpop.permute.xlu1 %1476  ;;  %v2108_v30 = vpop.permute.xlu2 %1516 }
 0x145   : > { %v1478_v28 = vunpack.i.l.bf16 %v1477_v15  ;;  %v1519_v4 = vunpack.i.h.bf16 %v2108_v30  ;;  %v1518_v14 = vunpack.i.l.bf16 %v2108_v30  ;;  %v2117_v39 = vpop.permute.xlu0 %1486  ;;  %v1479_v19 = vunpack.i.h.bf16 %v1477_v15 }
 0x146   : > { %825 = vmatpush.msrb.mxu3 %v762_v13  ;;  %v1489_v52 = vunpack.i.h.bf16 %v2117_v39  ;;  %v1488_v9 = vunpack.i.l.bf16 %v2117_v39 }
 0x147   : > { %v515_v8 = vsel %vm433_vm5, %v1434_v56, %v1518_v14  ;;  %v522_v7 = vsel %vm433_vm5, %v1484_v63, %v1519_v4  ;;  %v764_v20 = vsel %vm385_vm8, %v1478_v28, %v1448_v55 }
 0x148   : > { %826 = vmatpush.msrb.mxu3 %v759_v59  ;;  %587 = vmatpush.msrb.mxu0 %v515_v8  ;;  %v761_v54 = vsel %vm385_vm8, %v1489_v52, %v1458_v41  ;;  %v753_v56 = vsel %vm385_vm8, %v1479_v19, %v1488_v9 }
 0x149   : > { %605 = vmatpush.msrb.mxu1 %v522_v7  ;;  %804 = vmatpush.msrb.mxu2 %v764_v20 }
 0x14a   : > { %827 = vmatpush.msrb.mxu3 %v756_v58 }
 0x14b   : > { %805 = vmatpush.msrb.mxu2 %v761_v54  ;;  %v1409_v54 = vunpack.i.h.bf16 %v2003_v42 }
 0x14c   : > { %828 = vmatpush.msrb.mxu3 %v753_v56  ;;  %v2145_v63 = vpop.permute.xlu1 %1511  ;;  %v2147_v12 = vpop.permute.xlu2 %1531 }
 0x14d   : > { %v1497_v61 = vpop.permute.xlu0 %1496  ;;  %v1514_v5 = vunpack.i.h.bf16 %v2145_v63  ;;  %v1534_v31 = vunpack.i.h.bf16 %v2147_v12 }
 0x14e   : > { %829 = vmatpush.msrb.mxu3 %v750_v18  ;;  %v1498_v47 = vunpack.i.l.bf16 %v1497_v61  ;;  %v1499_v32 = vunpack.i.h.bf16 %v1497_v61  ;;  %v1408_v61 = vunpack.i.l.bf16 %v2003_v42 }
 0x150   : > { %v758_v38 = vsel %vm385_vm8, %v1498_v47, %v1468_v37  ;;  %v1414_v47 = vunpack.i.h.bf16 %v2014_v43 }
 0x151   : > { %806 = vmatpush.msrb.mxu2 %v758_v38 }
 0x154   : > { %v1527_v55 = vpop.permute.xlu1 %1526  ;;  %v2153_v17 = vpop.permute.xlu2 %1546 }
 0x155   : > { %v2155_v29 = vpop.permute.xlu0 %1506  ;;  %v1528_v41 = vunpack.i.l.bf16 %v1527_v55  ;;  %v1529_v13 = vunpack.i.h.bf16 %v1527_v55  ;;  %v1549_v37 = vunpack.i.h.bf16 %v2153_v17  ;;  %v1413_v55 = vunpack.i.l.bf16 %v2014_v43 }
 0x156   : > { %v1509_v23 = vunpack.i.h.bf16 %v2155_v29  ;;  %v1508_v15 = vunpack.i.l.bf16 %v2155_v29  ;;  %v959_v43 = vsel %vm956_vm0, %v1408_v61, %v1409_v54 }
 0x157   : > { %v752_v52 = vsel %vm385_vm8, %v1528_v41, %v1479_v19  ;;  %v749_v7 = vsel %vm385_vm8, %v1529_v13, %v1493_v24  ;;  %v746_v19 = vsel %vm385_vm8, %v1549_v37, %v1499_v32  ;;  %v1533_v13 = vunpack.i.l.bf16 %v2147_v12 }
 0x158   : > { %v755_v28 = vsel %vm385_vm8, %v1509_v23, %v1473_v62  ;;  %v747_v4 = vsel %vm385_vm8, %v1499_v32, %v1508_v15  ;;  %v944_v23 = vsel %vm941_vm1, %v1413_v55, %v1414_v47 }
 0x159   : > { %807 = vmatpush.msrb.mxu2 %v755_v28  ;;  %830 = vmatpush.msrb.mxu3 %v747_v4 }
 0x15b   : > { %808 = vmatpush.msrb.mxu2 %v752_v52 }
 0x15c   : > { %v1542_v59 = vpop.permute.xlu1 %1541  ;;  %v2165_v8 = vpop.permute.xlu2 %1561 }
 0x15d   : > { %v1544_v20 = vunpack.i.h.bf16 %v1542_v59  ;;  %v1543_v58 = vunpack.i.l.bf16 %v1542_v59  ;;  %v1564_v62 = vunpack.i.h.bf16 %v2165_v8  ;;  %v2169_v53 = vpop.permute.xlu0 %1521  ;;  %809 = vmatpush.msrb.mxu2 %v749_v7 }
 0x15e   : > { %v1524_v56 = vunpack.i.h.bf16 %v2169_v53  ;;  %v1523_v18 = vunpack.i.l.bf16 %v2169_v53 }
 0x15f   : > { %810 = vmatpush.msrb.mxu2 %v746_v19  ;;  %v512_v24 = vsel %vm433_vm5, %v1439_v22, %v1543_v58  ;;  %v519_v38 = vsel %vm433_vm5, %v1503_v44, %v1544_v20  ;;  %v1513_v22 = vunpack.i.l.bf16 %v2145_v63  ;;  %v913_v20 = vsel %vm910_vm3, %v1533_v13, %v1534_v31 }
 0x160   : > { %588 = vmatpush.msrb.mxu0 %v512_v24  ;;  %606 = vmatpush.msrb.mxu1 %v519_v38  ;;  %v743_v41 = vsel %vm385_vm8, %v1564_v62, %v1523_v18  ;;  %v744_v42 = vsel %vm385_vm8, %v1523_v18, %v1524_v56 }
 0x161   : > { %811 = vmatpush.msrb.mxu2 %v743_v41  ;;  %831 = vmatpush.msrb.mxu3 %v744_v42  ;;  %v929_v52 = vsel %vm926_vm2, %v1513_v22, %v1514_v5  ;;  %v1655_v5 = vmov 0  }
 0x162   : > { %1622 = vset.pattern.permute.xlu1 %v1655_v5  ;;  %1621 = vset.pattern.permute.xlu0 %v1655_v5 }
 0x163   : > { %812 = vmatpush.msrb.mxu2 %v1863_v48  ;;  %832 = vmatpush.msrb.mxu3 %v1868_v49 }
 0x164   : > { %v2194_v44 = vpop.permute.xlu1 %1556  ;;  %v2196_v32 = vpop.permute.xlu2 %1576  ;;  %1620 = vset.pattern.permute.xlu2 %v1655_v5 }
 0x165   : > { %1015 = vmatpush.msra.mxu3 %v959_v43  ;;  %v1559_v63 = vunpack.i.h.bf16 %v2194_v44  ;;  %v1558_v48 = vunpack.i.l.bf16 %v2194_v44  ;;  %v1578_v49 = vunpack.i.l.bf16 %v2196_v32  ;;  %v2203_v28 = vpop.permute.xlu0 %1536  ;;  %v1579_v4 = vunpack.i.h.bf16 %v2196_v32  ;;  %v1028_v32 = vld [vmem:[%s2384_s4] sm:$0xff] }
 0x166   : > { %v1538_v37 = vunpack.i.l.bf16 %v2203_v28 }
 0x167   : > { %1016 = vmatpush.msra.mxu3 %v944_v23  ;;  %v509_v12 = vsel %vm433_vm5, %v1444_v0, %v1558_v48  ;;  %v516_v59 = vsel %vm433_vm5, %v1518_v14, %v1559_v63  ;;  %v506_v1 = vsel %vm433_vm5, %v1454_v57, %v1578_v49  ;;  %v2228_v0 = vld [vmem:[%s2382_s2 + $0x8] sm:$0xff]  ;;  %v513_v30 = vsel %vm433_vm5, %v1543_v58, %v1579_v4 }
 0x168   : > { %589 = vmatpush.msrb.mxu0 %v509_v12  ;;  %v958_v7 = vsel %vm956_vm0, %v1538_v37, %v1408_v61  ;;  %607 = vmatpush.msrb.mxu1 %v516_v59  ;;  %v2269_v12 = vld [vmem:[%s2382_s2 + $0x10] sm:$0xff] }
 0x169   : > { %1017 = vmatpush.msra.mxu3 %v929_v52  ;;  %995 = vmatpush.msra.mxu2 %v958_v7  ;;  %v1030_v52 = vld [vmem:[%s2384_s4 + $0x10] sm:$0xff] }
 0x16a   : > { %590 = vmatpush.msrb.mxu0 %v506_v1  ;;  %608 = vmatpush.msrb.mxu1 %v513_v30  ;;  %v1623_v59 = vld [vmem:[%s1705_s26 + $0x10] sm:$0xff]  ;;  %v1031_v1 = vld [vmem:[%s2384_s4 + $0x18] sm:$0xff]  ;;  %v1077_v30 = vld [vmem:[%s2385_s5] sm:$0xff] }
 0x16b   : > { %1018 = vmatpush.msra.mxu3 %v913_v20  ;;  %1221 = vmatmul.msk.f32.vlgmr.msrb.gmra.mxu2 %vm553_vm14, %v2228_v0 }
 0x16c   : > { %v2234_v14 = vpop.permute.xlu1 %1571  ;;  %v2236_v33 = vpop.permute.xlu2 %1591  ;;  %1222 = vmatmul.msk.f32.vlgmr.msrb.gmra.mxu3 %vm553_vm14, %v2228_v0  ;;  %1044 = vperm.xlu0 %1621, %v1030_v52  }
 0x16d   : > { %1019 = vmatpush.msra.mxu3 %v1771_v27  ;;  %v2238_v57 = vpop.permute.xlu0 %1551  ;;  %v1573_v62 = vunpack.i.l.bf16 %v2234_v14  ;;  %v1593_v58 = vunpack.i.l.bf16 %v2236_v33  ;;  %1049 = vperm.xlu2 %1620, %v1031_v1  }
 0x16e   : > { %v1553_v54 = vunpack.i.l.bf16 %v2238_v57 }
 0x16f   : > { %v928_v27 = vsel %vm926_vm2, %v1573_v62, %v1513_v22  ;;  %v912_v61 = vsel %vm910_vm3, %v1593_v58, %v1533_v13 }
 0x170   : > { %v943_v18 = vsel %vm941_vm1, %v1553_v54, %v1413_v55  ;;  %v1029_v55 = vld [vmem:[%s2384_s4 + $0x8] sm:$0xff] }
 0x171   : > { %996 = vmatpush.msra.mxu2 %v943_v18  ;;  %1039 = vperm.xlu1 %1622, %v1029_v55  }
 0x173   : > { %997 = vmatpush.msra.mxu2 %v928_v27 }
 0x174   : > { %v1587_v19 = vpop.permute.xlu1 %1586  ;;  %v1607_v31 = vpop.permute.xlu2 %1606 }
 0x175   : > { %v1589_v47 = vunpack.i.h.bf16 %v1587_v19  ;;  %v1588_v24 = vunpack.i.l.bf16 %v1587_v19  ;;  %v1567_v38 = vpop.permute.xlu0 %1566  ;;  %998 = vmatpush.msra.mxu2 %v912_v61  ;;  %v1608_v19 = vunpack.i.l.bf16 %v1607_v31  ;;  %1034 = vperm.xlu2 %1620, %v1028_v32  }
 0x176   : > { %v1569_v41 = vunpack.i.h.bf16 %v1567_v38  ;;  %v1568_v42 = vunpack.i.l.bf16 %v1567_v38  ;;  %v1548_v38 = vunpack.i.l.bf16 %v2153_v17 }
 0x177   : > { %999 = vmatpush.msra.mxu2 %v1768_v26  ;;  %v883_v43 = vsel %vm880_vm6, %v1588_v24, %v1589_v47  ;;  %v507_v17 = vsel %vm433_vm5, %v1578_v49, %v1608_v19 }
 0x178   : > { %v898_v22 = vsel %vm895_vm4, %v1568_v42, %v1569_v41 }
 0x179   : > { %1020 = vmatpush.msra.mxu3 %v898_v22  ;;  %1080 = vperm.xlu1 %1622, %v1077_v30   ;;  %v1609_v22 = vunpack.i.h.bf16 %v1607_v31 }
 0x17b   : > { %1021 = vmatpush.msra.mxu3 %v883_v43 }
 0x17c   : > { %v1602_v23 = vpop.permute.xlu1 %1601  ;;  %v2274_v7 = vpop.permute.xlu2 %874 }
 0x17d   : > { %v1604_v13 = vunpack.i.h.bf16 %v1602_v23  ;;  %v1603_v63 = vunpack.i.l.bf16 %v1602_v23  ;;  %v2260_v4 = vpop.permute.xlu0 %1581  ;;  %v882_v41 = vsel %vm880_vm6, %v2274_v7, %v1588_v24  ;;  %v1539_v24 = vunpack.i.h.bf16 %v2203_v28 }
 0x17e   : > { %v1583_v46 = vunpack.i.l.bf16 %v2260_v4  ;;  %v1584_v49 = vunpack.i.h.bf16 %v2260_v4 }
 0x17f   : > { %v868_v26 = vsel %vm865_vm7, %v1603_v63, %v1604_v13  ;;  %v957_v34 = vsel %vm956_vm0, %v1539_v24, %v1538_v37 }
 0x180   : > { %1022 = vmatpush.msra.mxu3 %v868_v26  ;;  %v760_v23 = vsel %vm385_vm8, %v1469_v3, %v1583_v46  ;;  %v1076_v46 = vld [vmem:[%s2383_s3] sm:$0xff] }
 0x182   : > { %1023 = vmatpush.msra.mxu3 %v1623_v59 }
 0x183   : > { %1227 = vmatmul.msk.f32.vlgmr.msra.gmra.mxu3 %vm553_vm14, %v2269_v12 }
 0x184   : > { %v2276_v20 = vpop.permute.xlu1 %889  ;;  %v888_v37 = vpop.permute.xlu2 %887 }
 0x185   : > { %v1597_v18 = vpop.permute.xlu0 %1596  ;;  %v897_v27 = vsel %vm895_vm4, %v2276_v20, %v1568_v42  ;;  %v1563_v42 = vunpack.i.l.bf16 %v2165_v8  ;;  %v896_v6 = vsel %vm895_vm4, %v888_v37, %v2276_v20 }
 0x186   : > { %v1599_v61 = vunpack.i.h.bf16 %v1597_v18  ;;  %v1598_v47 = vunpack.i.l.bf16 %v1597_v18  ;;  %1000 = vmatpush.msra.mxu2 %v897_v27 }
 0x188   : > { %v503_v55 = vsel %vm433_vm5, %v1464_v45, %v1598_v47  ;;  %v510_v5 = vsel %vm433_vm5, %v1558_v48, %v1599_v61  ;;  %1001 = vmatpush.msra.mxu2 %v882_v41  ;;  %v766_v45 = vsel %vm385_vm8, %v1449_v51, %v1548_v38  ;;  %v504_v44 = vsel %vm433_vm5, %v1598_v47, %v1609_v22 }
 0x189   : > { %591 = vmatpush.msrb.mxu0 %v503_v55  ;;  %609 = vmatpush.msrb.mxu1 %v510_v5  ;;  %v1554_v48 = vunpack.i.h.bf16 %v2238_v57  ;;  %v1574_v51 = vunpack.i.h.bf16 %v2234_v14 }
 0x18b   : > { %592 = vmatpush.msrb.mxu0 %v1843_v21  ;;  %610 = vmatpush.msrb.mxu1 %v507_v17  ;;  %v763_v21 = vsel %vm385_vm8, %v1459_v40, %v1563_v42  ;;  %v1594_v40 = vunpack.i.h.bf16 %v2236_v33  ;;  %v942_v25 = vsel %vm941_vm1, %v1554_v48, %v1553_v54  ;;  %v927_v11 = vsel %vm926_vm2, %v1574_v51, %v1573_v62 }
 0x18c   : > { %v860_v8 = vpop.permute.xlu1 %859  ;;  %1218 = vmatmul.msk.f32.vlgmr.msrb.gmra.mxu0 %vm553_vm14, %v2104_v36 }
 0x18d   : > { %844 = vmatpush.msra.mxu0 %v766_v45  ;;  %v1612_v43 = vpop.permute.xlu0 %1611  ;;  %611 = vmatpush.msrb.mxu1 %v504_v44  ;;  %v867_v60 = vsel %vm865_vm7, %v860_v8, %v1603_v63  ;;  %v1624_v63 = vld [vmem:[%s1705_s26 + $0x8] sm:$0xff]  ;;  %v911_v28 = vsel %vm910_vm3, %v1594_v40, %v1593_v58 }
 0x18e   : > { %1002 = vmatpush.msra.mxu2 %v867_v60  ;;  %v1613_v31 = vunpack.i.l.bf16 %v1612_v43  ;;  %v1614_v13 = vunpack.i.h.bf16 %v1612_v43 }
 0x18f   : > { %845 = vmatpush.msra.mxu0 %v763_v21  ;;  %612 = vmatpush.msrb.mxu1 %v1930_v10  ;;  %v757_v10 = vsel %vm385_vm8, %v1474_v35, %v1584_v49 }
 0x190   : > { %1003 = vmatpush.msra.mxu2 %v1624_v63  ;;  %1219 = vmatmul.msk.f32.vlgmr.msrb.gmra.mxu1 %vm553_vm14, %v2104_v36  ;;  %v754_v3 = vsel %vm385_vm8, %v1488_v9, %v1613_v31  ;;  %v751_v36 = vsel %vm385_vm8, %v1494_v2, %v1614_v13 }
 0x191   : > { %846 = vmatpush.msra.mxu0 %v760_v23  ;;  %975 = vmatpush.msra.mxu1 %v957_v34 }
 0x192   : > { %1226 = vmatmul.msk.f32.vlgmr.msra.gmra.mxu2 %vm553_vm14, %v2269_v12 }
 0x193   : > { %847 = vmatpush.msra.mxu0 %v757_v10  ;;  %976 = vmatpush.msra.mxu1 %v942_v25 }
 0x194   : > { %v858_v14 = vpop.permute.xlu1 %857 }
 0x195   : > { %848 = vmatpush.msra.mxu0 %v754_v3  ;;  %977 = vmatpush.msra.mxu1 %v927_v11  ;;  %v1617_v35 = vpop.permute.xlu0 %1616  ;;  %v866_v29 = vsel %vm865_vm7, %v858_v14, %v860_v8 }
 0x196   : > { %v1619_v57 = vunpack.i.h.bf16 %v1617_v35  ;;  %v1618_v39 = vunpack.i.l.bf16 %v1617_v35 }
 0x197   : > { %849 = vmatpush.msra.mxu0 %v751_v36  ;;  %978 = vmatpush.msra.mxu1 %v911_v28 }
 0x198   : > { %v748_v9 = vsel %vm385_vm8, %v1508_v15, %v1618_v39  ;;  %v745_v2 = vsel %vm385_vm8, %v1524_v56, %v1619_v57  ;;  %v1625_v15 = vld [vmem:[%s1705_s26] sm:$0xff] }
 0x199   : > { %979 = vmatpush.msra.mxu1 %v1750_v16  ;;  %850 = vmatpush.msra.mxu0 %v748_v9 }
 0x19b   : > { %980 = vmatpush.msra.mxu1 %v896_v6  ;;  %851 = vmatpush.msra.mxu0 %v745_v2 }
 0x19d   : > { %v873_v33 = vpop.permute.xlu0 %872  ;;  %852 = vmatpush.msra.mxu0 %v1970_v50 }
 0x19e   : > { %1223 = vmatmul.msk.f32.vlgmr.msra.gmra.mxu0 %vm553_vm14, %v2228_v0  ;;  %v881_v16 = vsel %vm880_vm6, %v873_v33, %v2274_v7 }
 0x19f   : > { %981 = vmatpush.msra.mxu1 %v881_v16 }
 0x1a1   : > { %982 = vmatpush.msra.mxu1 %v866_v29 }
 0x1a3   : > { %983 = vmatpush.msra.mxu1 %v1625_v15 }
 0x1a4   : > { %1225 = vmatmul.msk.f32.vlgmr.msra.gmra.mxu1 %vm553_vm14, %v2269_v12 }
 0x1ab   : > { %v298_v58 = vpop.f32.mrf.mxu0 }
 0x1ac   : > { %v318_v52 = vpop.f32.mrf.mxu1 }
 0x1b1   : > { %v338_v62 = vpop.f32.mrf.mxu2 }
 0x1c6   : > { %v574_v53 = vpop.f32.mrf.mxu3 }
 0x1c7   : > { %v1050_v54 = vpop.permute.xlu2 %1049 }
 0x1cf   : > { %v1035_v61 = vpop.permute.xlu2 %1034 }
 0x1d0   : > { %v1053_v47 = vadd.f32 %v1035_v61, %v318_v52  ;;  %v1054_v22 = vadd.f32 %v1035_v61, %v338_v62  ;;  %v1052_v21 = vadd.f32 %v1035_v61, %v298_v58 }
 0x1d2   : > { %v1065_v24 = vmax.f32 %v1053_v47, 0.0  ;;  %v1066_v44 = vmax.f32 %v1054_v22, 0.0  ;;  %v1064_v31 = vmax.f32 %v1052_v21, 0.0 }
 0x1de   : > { %v1045_v7 = vpop.permute.xlu0 %1044 }
 0x1e3   : > { %v1040_v27 = vpop.permute.xlu1 %1039 }
 0x1e4   : > { %v1055_v49 = vadd.f32 %v1040_v27, %v574_v53 }
 0x1e6   : > { %v1067_v51 = vmax.f32 %v1055_v49, 0.0 }
 0x1eb   : > { %v1081_v23 = vpop.permute.xlu1 %1080 }
 0x1ee   : > { %v814_v26 = vpop.f32.mrf.mxu2 }
 0x1ef   : > { %v834_v56 = vpop.f32.mrf.mxu3  ;;  %v1058_v32 = vadd.f32 %v1045_v7, %v814_v26 }
 0x1f0   : > { %v1059_v1 = vadd.f32 %v1045_v7, %v834_v56 }
 0x1f1   : > { %v1070_v60 = vmax.f32 %v1058_v32, 0.0 }
 0x1f2   : > { %v1071_v38 = vmax.f32 %v1059_v1, 0.0 }
 0x206   : > { %v1025_v50 = vpop.f32.mrf.mxu3 }
 0x207   : > { %v1063_v4 = vadd.f32 %v1050_v54, %v1025_v50 }
 0x209   : > { %v1075_v0 = vmax.f32 %v1063_v4, 0.0  ;;  %v594_v59 = vpop.f32.mrf.mxu0 }
 0x20a   : > { %v1056_v19 = vadd.f32 %v1040_v27, %v594_v59 }
 0x20b   : > { %1138 = vmatpush.msrb.mxu2 %v1075_v0 }
 0x20c   : > { %v1068_v42 = vmax.f32 %v1056_v19, 0.0 }
 0x20d   : > { %v614_v18 = vpop.f32.mrf.mxu1 }
 0x20e   : > { %v1057_v55 = vadd.f32 %v1040_v27, %v614_v18 }
 0x210   : > { %v1069_v45 = vmax.f32 %v1057_v55, 0.0 }
 0x215   : > { %v1005_v20 = vpop.f32.mrf.mxu2 }
 0x216   : > { %v1062_v30 = vadd.f32 %v1050_v54, %v1005_v20 }
 0x218   : > { %v1074_v12 = vmax.f32 %v1062_v30, 0.0 }
 0x21a   : > { %1118 = vmatpush.msrb.mxu1 %v1074_v12 }
 0x21b   : > { %v854_v41 = vpop.f32.mrf.mxu0 }
 0x21c   : > { %v1060_v5 = vadd.f32 %v1045_v7, %v854_v41  ;;  %1119 = vmatpush.msrb.mxu1 %v1071_v38 }
 0x21e   : > { %v1072_v17 = vmax.f32 %v1060_v5, 0.0  ;;  %1120 = vmatpush.msrb.mxu1 %v1068_v42 }
 0x220   : > { %1139 = vmatpush.msrb.mxu2 %v1072_v17  ;;  %1121 = vmatpush.msrb.mxu1 %v1065_v24 }
 0x221   : > { %v985_v8 = vpop.f32.mrf.mxu1  ;;  %1229 = vmatmul.msk.f32.vlgmr.msrb.gmra.mxu1 %vm649_vm11, %v1076_v46 }
 0x222   : > { %v1061_v48 = vadd.f32 %v1050_v54, %v985_v8  ;;  %1140 = vmatpush.msrb.mxu2 %v1069_v45 }
 0x224   : > { %v1073_v43 = vmax.f32 %v1061_v48, 0.0  ;;  %1141 = vmatpush.msrb.mxu2 %v1066_v44 }
 0x225   : > { %1230 = vmatmul.msk.f32.vlgmr.msrb.gmra.mxu2 %vm649_vm11, %v1076_v46 }
 0x226   : > { %1098 = vmatpush.msrb.mxu0 %v1073_v43 }
 0x228   : > { %1099 = vmatpush.msrb.mxu0 %v1070_v60 }
 0x22a   : > { %1100 = vmatpush.msrb.mxu0 %v1067_v51 }
 0x22c   : > { %1101 = vmatpush.msrb.mxu0 %v1064_v31 }
 0x22d   : > { %1228 = vmatmul.msk.f32.vlgmr.msrb.gmra.mxu0 %vm649_vm11, %v1076_v46 }
 0x29e   : > { %v1123_v34 = vpop.f32.mrf.mxu1 }
 0x29f   : > { %v1124_v40 = vadd.f32 %v1123_v34, %v1081_v23 }
 0x2a1   : > { %v1147_v13 = vmax.f32 %v1124_v40, 0.0 }
 0x2a3   : > { %1150 = vst [vmem:[%s251_s28 + $0x8] sm:$0xff] %v1147_v13 }
 0x2a8   : > { %v1143_v63 = vpop.f32.mrf.mxu2 }
 0x2a9   : > { %v1144_v10 = vadd.f32 %v1143_v63, %v1081_v23 }
 0x2aa   : > { %v1103_v25 = vpop.f32.mrf.mxu0 }
 0x2ab   : > { %v1148_v3 = vmax.f32 %v1144_v10, 0.0  ;;  %v1104_v11 = vadd.f32 %v1103_v25, %v1081_v23 }
 0x2ad   : > { %1151 = vst [vmem:[%s251_s28 + $0x10] sm:$0xff] %v1148_v3  ;;  %v1146_v35 = vmax.f32 %v1104_v11, 0.0 }
 0x2af   : > { %1149 = vst [vmem:[%s251_s28] sm:$0xff] %v1146_v35 }
 0x2b0 PF: > { %s16_s21 = sadd.s32 1, %s1632_s21  }
 0x2b1   : > { %p13_p4 = scmp.ge.s32.totalorder %s16_s21, 4  }
 0x2b3   :  { %15 = sbr.rel (!%p13_p4) target bundleno = 1 (0x1), region = 76 }

</bundles_post_ra>
